<compile_context>
chip_gen: v5e
topology: v5e:2x2
jax: 0.10.0
libtpu: 0.0.40
codegen_flags: <defaults>
</compile_context>

<pallas_src>
import functools

import jax
import jax.numpy as jnp
from jax.experimental import pallas as pl
from jax.experimental.pallas import tpu as pltpu


@functools.lru_cache(maxsize=1)
def _num_tensorcores():
    """Best-effort TensorCore-per-chip count; falls back to a harmless 2."""
    try:
        info_fn = getattr(pltpu, "get_tpu_info", None)
        if info_fn is not None:
            info = info_fn()
            for name in ("num_tensorcores", "tensorcore_count", "num_cores",
                         "core_count", "cores_per_chip", "num_cores_per_chip"):
                v = getattr(info, name, None)
                if isinstance(v, int) and 1 <= v <= 4:
                    return v
    except Exception:
        pass
    return 2  # safe default: on 1-TC chips this only adds one masked surplus tile


def _pearson_sum_kernel(gt_ref, pre_ref, out_ref, *, seg_b, k, inv_b, rows,
                        tiles_per_core):
    """Accumulate the sum of per-row Pearson coefficients for one (tr, L) tile."""
    c = pl.program_id(0)          # core-split axis ("parallel")
    i = pl.program_id(1)          # row-block axis ("arbitrary", reduction)

    @pl.when(i == 0)
    def _():
        out_ref[...] = jnp.zeros_like(out_ref)

    g = gt_ref[...].astype(jnp.float32)          # (tr, L), L = k*B lanes
    p = pre_ref[...].astype(jnp.float32)

    tr, L = gt_ref.shape

    # 0/1 segment selector built in-kernel (tiny VPU work, no extra DMA):
    # column j sums lanes [j*B, (j+1)*B) of a packed row.  Exact in bf16.
    lane = jax.lax.broadcasted_iota(jnp.int32, (L, k), 0)
    col = jax.lax.broadcasted_iota(jnp.int32, (L, k), 1)
    e = ((lane >= col * seg_b) & (lane < (col + 1) * seg_b)).astype(jnp.bfloat16)

    def seg_sum(x):
        # Segmented sum on the MXU with a 2-pass bf16 split.  E is 0/1 so
        # every partial product is exact; only the hi/lo decomposition of x
        # limits accuracy (~2^-16 relative), with f32 accumulation throughout.
        x_hi = x.astype(jnp.bfloat16)
        x_lo = (x - x_hi.astype(jnp.float32)).astype(jnp.bfloat16)
        d = functools.partial(jnp.dot, preferred_element_type=jnp.float32)
        return d(x_hi, e) + d(x_lo, e)            # (tr, k)

    # Raw moments of every original length-B row.
    s_g = seg_sum(g)
    s_p = seg_sum(p)
    s_gg = seg_sum(g * g)
    s_pp = seg_sum(p * p)
    s_gp = seg_sum(g * p)

    # One-pass centered moments:  sum((x - x̄)(y - ȳ)) = S_xy - S_x * S_y / B.
    c_gg = s_gg - s_g * s_g * inv_b
    c_pp = s_pp - s_p * s_p * inv_b
    c_gp = s_gp - s_g * s_p * inv_b

    denom = jnp.sqrt(jnp.maximum(c_gg * c_pp, 0.0)) + 0.01
    pear = c_gp / denom                          # (tr, k)

    # Mask rows past the true packed-row count (edge tiles / surplus clamped
    # core-split tiles compute on stale buffer data; select discards it).
    row0 = (c * tiles_per_core + i) * tr
    rid = row0 + jax.lax.broadcasted_iota(jnp.int32, (tr, 1), 0)   # (tr, 1)
    pear = jnp.where(rid < rows, pear, 0.0)

    # Broadcast the scalar tile-sum over the core's resident (8, 128) block.
    out_ref[...] += jnp.sum(pear)


@functools.partial(jax.jit, static_argnames=("block_rows", "use_bf16_inputs"))
def p_loss2(gt_lable, pre_lable, block_rows=8192, use_bf16_inputs=False):
    """Pallas implementation of P_loss2.forward. Inputs: (M, N, A, B)."""
    M, N, A, B = gt_lable.shape
    R = M * N * A

    # ---- lane packing: k length-B rows per packed row so tiles are lane-dense
    k = max(1, 128 // B) if B < 128 else 1
    L = k * B
    rows = -(-R // k)                    # packed row count (ceil)
    pad_rows = rows * k - R

    gt2d = gt_lable.reshape(R, B)        # contiguous reinterpretation (no copy)
    pre2d = pre_lable.reshape(R, B)
    if pad_rows:
        # Zero-padded length-B rows yield pearson == 0 exactly (c_gg = c_pp =
        # c_gp = 0, denom = 0.01), so no extra masking is needed for them.
        gt2d = jnp.pad(gt2d, ((0, pad_rows), (0, 0)))
        pre2d = jnp.pad(pre2d, ((0, pad_rows), (0, 0)))
    gt2 = gt2d.reshape(rows, L)
    pre2 = pre2d.reshape(rows, L)

    if use_bf16_inputs:
        # Halves HBM traffic; kernel still accumulates in f32. ~1e-3-level
        # rounding of the loss — keep off when f32 accuracy is required.
        gt2 = gt2.astype(jnp.bfloat16)
        pre2 = pre2.astype(jnp.bfloat16)

    # ---- tile size: temporaries-aware VMEM budget --------------------------
    in_itemsize = jnp.dtype(gt2.dtype).itemsize
    unit = 8 if in_itemsize >= 4 else 16           # min sublane tile (f32/bf16)
    per_row_bytes = (4 * L * in_itemsize            # 2 inputs x 2 pipeline bufs
                     + 5 * L * 4                    # g, p + up to 3 f32 products
                     + 10 * L * 2)                  # 5 x (hi, lo) bf16 operands
    vmem_budget = 36 << 20
    max_tr = max(unit, (vmem_budget // per_row_bytes) // unit * unit)
    tr_cap = max(unit, (min(block_rows, max_tr) // unit) * unit)

    if rows <= tr_cap:
        tr = rows                        # single row-block (any row count legal)
        row_blocks = 1
    else:
        tr = tr_cap                      # multiple of `unit`
        row_blocks = pl.cdiv(rows, tr)

    # ---- core split: actual TC count when known (essential on v7x) ---------
    nc = _num_tensorcores() if row_blocks >= 2 else 1
    nc = max(1, min(nc, row_blocks))
    tiles_per_core = pl.cdiv(row_blocks, nc)
    grid = (nc, tiles_per_core)

    def in_map(ci, ii):
        # Clamp so surplus grid steps re-read a valid block (masked in-kernel
        # via the UNCLAMPED row index).
        return (jnp.minimum(ci * tiles_per_core + ii, row_blocks - 1), 0)

    kernel = functools.partial(
        _pearson_sum_kernel,
        seg_b=B,
        k=k,
        inv_b=1.0 / B,
        rows=rows,
        tiles_per_core=tiles_per_core,
    )

    out = pl.pallas_call(
        kernel,
        out_shape=jax.ShapeDtypeStruct((nc * 8, 128), jnp.float32),
        grid_spec=pltpu.PrefetchScalarGridSpec(
            num_scalar_prefetch=0,
            grid=grid,
            in_specs=[
                pl.BlockSpec((tr, L), in_map),
                pl.BlockSpec((tr, L), in_map),
            ],
            out_specs=pl.BlockSpec((8, 128), lambda ci, ii: (ci, 0)),
        ),
        compiler_params=pltpu.CompilerParams(
            dimension_semantics=("parallel", "arbitrary"),
            vmem_limit_bytes=48 << 20,
        ),
    )(gt2, pre2)

    # Each core's (8, 128) block holds its partial sum replicated; pick one
    # representative element per core and add them (exact, no rescaling).
    total = jnp.sum(out[0::8, 0])
    return 1.0 - total / jnp.float32(R)


def p_loss2_ref(gt_lable, pre_lable):
    """Pure-JAX reference mirroring the PyTorch module."""
    M, N, A, B = gt_lable.shape
    g = gt_lable - jnp.mean(gt_lable, axis=3, keepdims=True)
    p = pre_lable - jnp.mean(pre_lable, axis=3, keepdims=True)
    a_pow = jnp.sqrt(jnp.sum(g * g, axis=3))
    b_pow = jnp.sqrt(jnp.sum(p * p, axis=3))
    pearson = jnp.sum(g * p, axis=3) / (a_pow * b_pow + 0.01)
    return 1.0 - jnp.sum(pearson) / (M * N * A)


if __name__ == "__main__":
    key = jax.random.PRNGKey(0)
    k1, k2 = jax.random.split(key)

    # (M, N, A, B) — small shapes consistent with the module's 4-D contract.
    M, N, A, B = 2, 4, 16, 16
    gt = jax.random.normal(k1, (M, N, A, B), dtype=jnp.float32)
    pre = jax.random.normal(k2, (M, N, A, B), dtype=jnp.float32)

    ref = p_loss2_ref(gt, pre)

    # Default (single-block) path.
    loss = p_loss2(gt, pre)
    jax.block_until_ready(loss)
    assert jnp.allclose(loss, ref, atol=2e-4, rtol=2e-4), (loss, ref)

    # Multi-block / core-split path (tiny forced tile).
    loss_mb = p_loss2(gt, pre, block_rows=8)
    jax.block_until_ready(loss_mb)
    assert jnp.allclose(loss_mb, ref, atol=2e-4, rtol=2e-4), (loss_mb, ref)

    # Ragged lane-packing path (R not divisible by the pack factor).
    M2, N2, A2, B2 = 3, 5, 7, 16
    gt_r = jax.random.normal(k1, (M2, N2, A2, B2), dtype=jnp.float32)
    pre_r = jax.random.normal(k2, (M2, N2, A2, B2), dtype=jnp.float32)
    loss_r = p_loss2(gt_r, pre_r)
    jax.block_until_ready(loss_r)
    ref_r = p_loss2_ref(gt_r, pre_r)
    assert jnp.allclose(loss_r, ref_r, atol=2e-4, rtol=2e-4), (loss_r, ref_r)

    print("KERNEL_OK")
</pallas_src>

<mosaic_0001>
module attributes {stable_mosaic.version = 11 : i64} {
  func.func @_pearson_sum_kernel(%arg0: i32, %arg1: i32, %arg2: memref<16x128xf32, #tpu.memory_space<vmem>>, %arg3: memref<16x128xf32, #tpu.memory_space<vmem>>, %arg4: memref<8x128xf32, #tpu.memory_space<vmem>>) attributes {dimension_semantics = [#tpu.dimension_semantics<parallel>, #tpu.dimension_semantics<arbitrary>], iteration_bounds = array<i64: 1, 1>, scalar_prefetch = 0 : i64, scratch_operands = 0 : i64, tpu.core_type = #tpu.core_type<tc>, window_params = [{transform_indices = @transform_0, window_bounds = array<i64: 16, 128>}, {transform_indices = @transform_1, window_bounds = array<i64: 16, 128>}, {transform_indices = @transform_2, window_bounds = array<i64: 8, 128>}]} {
    %c0_i32 = arith.constant 0 : i32
    %0 = arith.cmpi eq, %arg1, %c0_i32 : i32
    %1 = arith.extui %0 : i1 to i32
    %c0_i32_0 = arith.constant 0 : i32
    %2 = arith.cmpi ne, %1, %c0_i32_0 : i32
    scf.if %2 {
      %cst_28 = arith.constant 0.000000e+00 : f32
      %96 = vector.broadcast %cst_28 : f32 to vector<8x128xf32>
      %c0_29 = arith.constant 0 : index
      %c0_30 = arith.constant 0 : index
      %97 = vector.load %arg4[%c0_29, %c0_30] : memref<8x128xf32, #tpu.memory_space<vmem>>, vector<8x128xf32>
      tpu.vector_store %arg4[%c0_29, %c0_30], %96 {strides = array<i32>} : memref<8x128xf32, #tpu.memory_space<vmem>>, vector<8x128xf32>,
    } else {
    }
    %c0 = arith.constant 0 : index
    %c0_1 = arith.constant 0 : index
    %3 = vector.load %arg2[%c0, %c0_1] : memref<16x128xf32, #tpu.memory_space<vmem>>, vector<16x128xf32>
    %c0_2 = arith.constant 0 : index
    %c0_3 = arith.constant 0 : index
    %4 = vector.load %arg3[%c0_2, %c0_3] : memref<16x128xf32, #tpu.memory_space<vmem>>, vector<16x128xf32>
    %5 = tpu.iota {dimensions = array<i32: 0>} : vector<128x8xi32>
    %6 = tpu.iota {dimensions = array<i32: 1>} : vector<128x8xi32>
    %c16_i32 = arith.constant 16 : i32
    %7 = vector.broadcast %c16_i32 : i32 to vector<128x8xi32>
    %8 = arith.muli %6, %7 : vector<128x8xi32>
    %9 = arith.cmpi sge, %5, %8 : vector<128x8xi32>
    %c1_i32 = arith.constant 1 : i32
    %10 = vector.broadcast %c1_i32 : i32 to vector<128x8xi32>
    %11 = arith.addi %6, %10 : vector<128x8xi32>
    %c16_i32_4 = arith.constant 16 : i32
    %12 = vector.broadcast %c16_i32_4 : i32 to vector<128x8xi32>
    %13 = arith.muli %11, %12 : vector<128x8xi32>
    %14 = arith.cmpi slt, %5, %13 : vector<128x8xi32>
    %15 = arith.andi %9, %14 : vector<128x8xi1>
    %16 = arith.extui %15 : vector<128x8xi1> to vector<128x8xi32>
    %17 = arith.sitofp %16 : vector<128x8xi32> to vector<128x8xf32>
    %18 = arith.truncf %17 : vector<128x8xf32> to vector<128x8xbf16>
    %19 = arith.truncf %3 : vector<16x128xf32> to vector<16x128xbf16>
    %20 = arith.extf %19 : vector<16x128xbf16> to vector<16x128xf32>
    %21 = arith.subf %3, %20 : vector<16x128xf32>
    %22 = arith.truncf %21 : vector<16x128xf32> to vector<16x128xbf16>
    %cst = arith.constant dense<0.000000e+00> : vector<16x8xf32>
    %23 = tpu.matmul %19, %18, %cst {dimension_numbers = #tpu.dot_dimension_numbers<[1], [0], [0], [1], [0, 0, 1, 1], [], []>} : vector<16x128xbf16>, vector<128x8xbf16>, vector<16x8xf32> -> vector<16x8xf32>
    %cst_5 = arith.constant dense<0.000000e+00> : vector<16x8xf32>
    %24 = tpu.matmul %22, %18, %cst_5 {dimension_numbers = #tpu.dot_dimension_numbers<[1], [0], [0], [1], [0, 0, 1, 1], [], []>} : vector<16x128xbf16>, vector<128x8xbf16>, vector<16x8xf32> -> vector<16x8xf32>
    %25 = arith.addf %23, %24 : vector<16x8xf32>
    %26 = arith.truncf %4 : vector<16x128xf32> to vector<16x128xbf16>
    %27 = arith.extf %26 : vector<16x128xbf16> to vector<16x128xf32>
    %28 = arith.subf %4, %27 : vector<16x128xf32>
    %29 = arith.truncf %28 : vector<16x128xf32> to vector<16x128xbf16>
    %cst_6 = arith.constant dense<0.000000e+00> : vector<16x8xf32>
    %30 = tpu.matmul %26, %18, %cst_6 {dimension_numbers = #tpu.dot_dimension_numbers<[1], [0], [0], [1], [0, 0, 1, 1], [], []>} : vector<16x128xbf16>, vector<128x8xbf16>, vector<16x8xf32> -> vector<16x8xf32>
    %cst_7 = arith.constant dense<0.000000e+00> : vector<16x8xf32>
    %31 = tpu.matmul %29, %18, %cst_7 {dimension_numbers = #tpu.dot_dimension_numbers<[1], [0], [0], [1], [0, 0, 1, 1], [], []>} : vector<16x128xbf16>, vector<128x8xbf16>, vector<16x8xf32> -> vector<16x8xf32>
    %32 = arith.addf %30, %31 : vector<16x8xf32>
    %33 = arith.mulf %3, %3 : vector<16x128xf32>
    %34 = arith.truncf %33 : vector<16x128xf32> to vector<16x128xbf16>
    %35 = arith.extf %34 : vector<16x128xbf16> to vector<16x128xf32>
    %36 = arith.subf %33, %35 : vector<16x128xf32>
    %37 = arith.truncf %36 : vector<16x128xf32> to vector<16x128xbf16>
    %cst_8 = arith.constant dense<0.000000e+00> : vector<16x8xf32>
    %38 = tpu.matmul %34, %18, %cst_8 {dimension_numbers = #tpu.dot_dimension_numbers<[1], [0], [0], [1], [0, 0, 1, 1], [], []>} : vector<16x128xbf16>, vector<128x8xbf16>, vector<16x8xf32> -> vector<16x8xf32>
    %cst_9 = arith.constant dense<0.000000e+00> : vector<16x8xf32>
    %39 = tpu.matmul %37, %18, %cst_9 {dimension_numbers = #tpu.dot_dimension_numbers<[1], [0], [0], [1], [0, 0, 1, 1], [], []>} : vector<16x128xbf16>, vector<128x8xbf16>, vector<16x8xf32> -> vector<16x8xf32>
    %40 = arith.addf %38, %39 : vector<16x8xf32>
    %41 = arith.mulf %4, %4 : vector<16x128xf32>
    %42 = arith.truncf %41 : vector<16x128xf32> to vector<16x128xbf16>
    %43 = arith.extf %42 : vector<16x128xbf16> to vector<16x128xf32>
    %44 = arith.subf %41, %43 : vector<16x128xf32>
    %45 = arith.truncf %44 : vector<16x128xf32> to vector<16x128xbf16>
    %cst_10 = arith.constant dense<0.000000e+00> : vector<16x8xf32>
    %46 = tpu.matmul %42, %18, %cst_10 {dimension_numbers = #tpu.dot_dimension_numbers<[1], [0], [0], [1], [0, 0, 1, 1], [], []>} : vector<16x128xbf16>, vector<128x8xbf16>, vector<16x8xf32> -> vector<16x8xf32>
    %cst_11 = arith.constant dense<0.000000e+00> : vector<16x8xf32>
    %47 = tpu.matmul %45, %18, %cst_11 {dimension_numbers = #tpu.dot_dimension_numbers<[1], [0], [0], [1], [0, 0, 1, 1], [], []>} : vector<16x128xbf16>, vector<128x8xbf16>, vector<16x8xf32> -> vector<16x8xf32>
    %48 = arith.addf %46, %47 : vector<16x8xf32>
    %49 = arith.mulf %3, %4 : vector<16x128xf32>
    %50 = arith.truncf %49 : vector<16x128xf32> to vector<16x128xbf16>
    %51 = arith.extf %50 : vector<16x128xbf16> to vector<16x128xf32>
    %52 = arith.subf %49, %51 : vector<16x128xf32>
    %53 = arith.truncf %52 : vector<16x128xf32> to vector<16x128xbf16>
    %cst_12 = arith.constant dense<0.000000e+00> : vector<16x8xf32>
    %54 = tpu.matmul %50, %18, %cst_12 {dimension_numbers = #tpu.dot_dimension_numbers<[1], [0], [0], [1], [0, 0, 1, 1], [], []>} : vector<16x128xbf16>, vector<128x8xbf16>, vector<16x8xf32> -> vector<16x8xf32>
    %cst_13 = arith.constant dense<0.000000e+00> : vector<16x8xf32>
    %55 = tpu.matmul %53, %18, %cst_13 {dimension_numbers = #tpu.dot_dimension_numbers<[1], [0], [0], [1], [0, 0, 1, 1], [], []>} : vector<16x128xbf16>, vector<128x8xbf16>, vector<16x8xf32> -> vector<16x8xf32>
    %56 = arith.addf %54, %55 : vector<16x8xf32>
    %57 = arith.mulf %25, %25 : vector<16x8xf32>
    %cst_14 = arith.constant 6.250000e-02 : f32
    %58 = vector.broadcast %cst_14 : f32 to vector<16x8xf32>
    %59 = arith.mulf %57, %58 : vector<16x8xf32>
    %60 = arith.subf %40, %59 : vector<16x8xf32>
    %61 = arith.mulf %32, %32 : vector<16x8xf32>
    %cst_15 = arith.constant 6.250000e-02 : f32
    %62 = vector.broadcast %cst_15 : f32 to vector<16x8xf32>
    %63 = arith.mulf %61, %62 : vector<16x8xf32>
    %64 = arith.subf %48, %63 : vector<16x8xf32>
    %65 = arith.mulf %25, %32 : vector<16x8xf32>
    %cst_16 = arith.constant 6.250000e-02 : f32
    %66 = vector.broadcast %cst_16 : f32 to vector<16x8xf32>
    %67 = arith.mulf %65, %66 : vector<16x8xf32>
    %68 = arith.subf %56, %67 : vector<16x8xf32>
    %69 = arith.mulf %60, %64 : vector<16x8xf32>
    %cst_17 = arith.constant 0.000000e+00 : f32
    %70 = vector.broadcast %cst_17 : f32 to vector<16x8xf32>
    %71 = arith.maximumf %69, %70 : vector<16x8xf32>
    %72 = math.sqrt %71 : vector<16x8xf32>
    %cst_18 = arith.constant 0.00999999977 : f32
    %73 = vector.broadcast %cst_18 : f32 to vector<16x8xf32>
    %74 = arith.addf %72, %73 : vector<16x8xf32>
    %75 = arith.divf %68, %74 : vector<16x8xf32>
    %c1_i32_19 = arith.constant 1 : i32
    %76 = arith.muli %arg0, %c1_i32_19 : i32
    %77 = arith.addi %76, %arg1 : i32
    %c16_i32_20 = arith.constant 16 : i32
    %78 = arith.muli %77, %c16_i32_20 : i32
    %79 = tpu.iota {dimensions = array<i32: 0>} : vector<16x1xi32>
    %80 = vector.broadcast %78 : i32 to vector<16x1xi32>
    %81 = arith.addi %80, %79 : vector<16x1xi32>
    %c16_i32_21 = arith.constant 16 : i32
    %82 = vector.broadcast %c16_i32_21 : i32 to vector<16x1xi32>
    %83 = arith.cmpi slt, %81, %82 : vector<16x1xi32>
    %cst_22 = arith.constant 0.000000e+00 : f32
    %84 = vector.shape_cast %83 : vector<16x1xi1> to vector<16x1xi1>
    %85 = vector.broadcast %84 : vector<16x1xi1> to vector<16x8xi1>
    %86 = vector.broadcast %cst_22 : f32 to vector<16x8xf32>
    %87 = arith.select %85, %75, %86 : vector<16x8xi1>, vector<16x8xf32>
    %c0_23 = arith.constant 0 : index
    %c0_24 = arith.constant 0 : index
    %88 = vector.load %arg4[%c0_23, %c0_24] : memref<8x128xf32, #tpu.memory_space<vmem>>, vector<8x128xf32>
    %89 = vector.shape_cast %87 : vector<16x8xf32> to vector<1x16x8xf32>
    %cst_25 = arith.constant dense<0.000000e+00> : vector<1xf32>
    %90 = vector.multi_reduction <add>, %89, %cst_25 [1, 2] : vector<1x16x8xf32> to vector<1xf32>
    %91 = vector.shape_cast %90 : vector<1xf32> to vector<1x1x1xf32>
    %92 = vector.extract %91[0, 0, 0] : f32 from vector<1x1x1xf32>
    %93 = vector.broadcast %92 : f32 to vector<8x128xf32>
    %94 = arith.addf %88, %93 : vector<8x128xf32>
    %c0_26 = arith.constant 0 : index
    %c0_27 = arith.constant 0 : index
    %95 = vector.load %arg4[%c0_26, %c0_27] : memref<8x128xf32, #tpu.memory_space<vmem>>, vector<8x128xf32>
    tpu.vector_store %arg4[%c0_26, %c0_27], %94 {strides = array<i32>} : memref<8x128xf32, #tpu.memory_space<vmem>>, vector<8x128xf32>,
    return
  }
  func.func @transform_0(%arg0: i32, %arg1: i32) -> (i32, i32) {
    %c1_i32 = arith.constant 1 : i32
    %0 = arith.muli %arg0, %c1_i32 : i32
    %1 = arith.addi %0, %arg1 : i32
    %c0_i32 = arith.constant 0 : i32
    %2 = arith.minsi %1, %c0_i32 : i32
    %c0_i32_0 = arith.constant 0 : i32
    %c0_i32_1 = arith.constant 0 : i32
    return %2, %c0_i32_0 : i32, i32
  }
  func.func @transform_1(%arg0: i32, %arg1: i32) -> (i32, i32) {
    %c1_i32 = arith.constant 1 : i32
    %0 = arith.muli %arg0, %c1_i32 : i32
    %1 = arith.addi %0, %arg1 : i32
    %c0_i32 = arith.constant 0 : i32
    %2 = arith.minsi %1, %c0_i32 : i32
    %c0_i32_0 = arith.constant 0 : i32
    %c0_i32_1 = arith.constant 0 : i32
    return %2, %c0_i32_0 : i32, i32
  }
  func.func @transform_2(%arg0: i32, %arg1: i32) -> (i32, i32) {
    %c0_i32 = arith.constant 0 : i32
    %c0_i32_0 = arith.constant 0 : i32
    return %arg0, %c0_i32 : i32, i32
  }
}

</mosaic_0001>

<bundles_post_ra>
// kernel: p_loss2.1
= control target key start
LH: loop header
LB: loop body
LE: loop exit
PB: predicated region body
PF: predicated region fallthrough
CT: control target
= control target key end

     0   :  { %v84_v0 = vlaneseq  ;;  %v717_v14 = vmov 1.0|1.0   ;;  %s1127_s1 = inlined_call_operand.vmem [shape: f32[16,128], index: 1, kind: input, shape index: {}]   ;;  %s1128_s0 = inlined_call_operand.vmem [shape: f32[16,128], index: 0, kind: input, shape index: {}]   ;;  %s1129_s2 = inlined_call_operand.vmem [shape: f32[8,128], index: 2, kind: output, shape index: {}]  }
   0x1   :  { %v850_v26 = vld [vmem:[%s1127_s1] sm:$0xff]  ;;  %v855_v27 = vld [vmem:[%s1127_s1 + $0x8] sm:$0xff] }
   0x2   :  { %v733_v1 = vshrl.u32 %v84_v0, 7  ;;  %v102_v2 = vand.u32 127, %v84_v0  ;;  %v862_v28 = vld [vmem:[%s1128_s0] sm:$0xff]  ;;  %v867_v29 = vld [vmem:[%s1128_s0 + $0x8] sm:$0xff]  ;;  %v235_v32 = vpack.c.bf16 %v850_v26, %v850_v26  ;;  %v236_v33 = vpack.c.bf16 %v855_v27, %v855_v27 }
   0x3   :  { %v194_v34 = vpack.c.bf16 %v862_v28, %v862_v28  ;;  %v195_v35 = vpack.c.bf16 %v867_v29, %v867_v29  ;;  %v276_v54 = vmul.f32 %v862_v28, %v862_v28  ;;  %v277_v55 = vmul.f32 %v867_v29, %v867_v29 }
   0x4   :  { %v99_v3 = vadd.s32 112, %v733_v1  ;;  %v100_v4 = vadd.s32 120, %v733_v1  ;;  %v737_v5 = vmul.u32 16, %v102_v2  ;;  %v120_v6 = vadd.s32 1, %v102_v2 }
   0x5   :  { %v97_v7 = vadd.s32 96, %v733_v1  ;;  %v98_v9 = vadd.s32 104, %v733_v1  ;;  %v95_v10 = vadd.s32 80, %v733_v1  ;;  %v96_v11 = vadd.s32 88, %v733_v1 }
   0x6   :  { %vm118_vm0 = vcmp.ge.s32.totalorder %v99_v3, %v737_v5  ;;  %v741_v8 = vmul.u32 16, %v120_v6  ;;  %vm119_vm1 = vcmp.ge.s32.totalorder %v100_v4, %v737_v5  ;;  %v93_v13 = vadd.s32 64, %v733_v1 }
   0x7   :  { %vm116_vm5 = vcmp.ge.s32.totalorder %v97_v7, %v737_v5  ;;  %vm117_vm8 = vcmp.ge.s32.totalorder %v98_v9, %v737_v5  ;;  %vm114_vm12 = vcmp.ge.s32.totalorder %v95_v10, %v737_v5  ;;  %v94_v15 = vadd.s32 72, %v733_v1 }
   0x8   :  { %vm136_vm2 = vcmp.lt.s32.totalorder %v99_v3, %v741_v8  ;;  %vm137_vm3 = vcmp.lt.s32.totalorder %v100_v4, %v741_v8  ;;  %vm134_vm6 = vcmp.lt.s32.totalorder %v97_v7, %v741_v8  ;;  %vm135_vm9 = vcmp.lt.s32.totalorder %v98_v9, %v741_v8 }
   0x9   :  { %vm152_vm4 = vmand %vm118_vm0, %vm136_vm2  ;;  %vm132_vm13 = vcmp.lt.s32.totalorder %v95_v10, %v741_v8  ;;  %vm115_vm15 = vcmp.ge.s32.totalorder %v96_v11, %v737_v5  ;;  %vm133_vm0 = vcmp.lt.s32.totalorder %v96_v11, %v741_v8  ;;  %v91_v17 = vadd.s32 48, %v733_v1 }
   0xa   :  { %vm153_vm7 = vmand %vm119_vm1, %vm137_vm3  ;;  %vm112_vm3 = vcmp.ge.s32.totalorder %v93_v13, %v737_v5  ;;  %v92_v18 = vadd.s32 56, %v733_v1  ;;  %v89_v20 = vadd.s32 32, %v733_v1  ;;  %v90_v21 = vadd.s32 40, %v733_v1 }
   0xb   :  { %vm753_vm10 = vmpackc.low %vm153_vm7, %vm152_vm4  ;;  %vm130_vm4 = vcmp.lt.s32.totalorder %v93_v13, %v741_v8  ;;  %vm131_vm7 = vcmp.lt.s32.totalorder %v94_v15, %v741_v8  ;;  %v87_v23 = vadd.s32 16, %v733_v1  ;;  %v88_v24 = vadd.s32 24, %v733_v1 }
   0xc   :  { %546 = vmatpush.bf16.msk.msra.mxu0 %vm753_vm10, %v717_v14  ;;  %562 = vmatpush.bf16.msk.msra.mxu1 %vm753_vm10, %v717_v14  ;;  %vm150_vm11 = vmand %vm116_vm5, %vm134_vm6  ;;  %vm113_vm6 = vcmp.ge.s32.totalorder %v94_v15, %v737_v5  ;;  %v86_v31 = vadd.s32 8, %v733_v1  ;;  %v237_v37 = vunpack.c.l.bf16 %v235_v32  ;;  %v238_v38 = vunpack.c.l.bf16 %v236_v33 }
   0xd   :  { %578 = vmatpush.bf16.msk.msra.mxu2 %vm753_vm10, %v717_v14  ;;  %594 = vmatpush.bf16.msk.msra.mxu3 %vm753_vm10, %v717_v14  ;;  %vm151_vm14 = vmand %vm117_vm8, %vm135_vm9  ;;  %v196_v39 = vunpack.c.l.bf16 %v194_v34  ;;  %v197_v40 = vunpack.c.l.bf16 %v195_v35  ;;  %v258_v43 = vunpack.c.l.b16 %v235_v32  ;;  %v259_v44 = vunpack.c.l.b16 %v236_v33 }
   0xe   :  { %vm775_vm1 = vmpackc.low %vm151_vm14, %vm150_vm11  ;;  %vm110_vm11 = vcmp.ge.s32.totalorder %v91_v17, %v737_v5  ;;  %vm111_vm14 = vcmp.ge.s32.totalorder %v92_v18, %v737_v5  ;;  %v239_v41 = vsub.f32 %v850_v26, %v237_v37  ;;  %v240_v42 = vsub.f32 %v855_v27, %v238_v38 }
   0xf   :  { %vm148_vm2 = vmand %vm114_vm12, %vm132_vm13  ;;  %vm128_vm12 = vcmp.lt.s32.totalorder %v91_v17, %v741_v8  ;;  %v198_v46 = vsub.f32 %v862_v28, %v196_v39  ;;  %v199_v47 = vsub.f32 %v867_v29, %v197_v40  ;;  %v217_v48 = vunpack.c.l.b16 %v194_v34 }
  0x10   :  { %548 = vmatpush.bf16.msk.msra.mxu0 %vm775_vm1, %v717_v14  ;;  %564 = vmatpush.bf16.msk.msra.mxu1 %vm775_vm1, %v717_v14  ;;  %vm149_vm5 = vmand %vm115_vm15, %vm133_vm0  ;;  %vm129_vm15 = vcmp.lt.s32.totalorder %v92_v18, %v741_v8  ;;  %v218_v49 = vunpack.c.l.b16 %v195_v35  ;;  %v241_v50 = vpack.c.bf16 %v240_v42, %v239_v41  ;;  %v260_v51 = vpack.c.b16 %v259_v44, %v258_v43 }
  0x11   :  { %580 = vmatpush.bf16.msk.msra.mxu2 %vm775_vm1, %v717_v14  ;;  %596 = vmatpush.bf16.msk.msra.mxu3 %vm775_vm1, %v717_v14  ;;  %vm797_vm8 = vmpackc.low %vm149_vm5, %vm148_vm2  ;;  %v200_v52 = vpack.c.bf16 %v199_v47, %v198_v46  ;;  %v319_v56 = vmul.f32 %v850_v26, %v850_v26  ;;  %v320_v57 = vmul.f32 %v855_v27, %v855_v27 }
  0x12   :  { %vm146_vm9 = vmand %vm112_vm3, %vm130_vm4  ;;  %vm108_vm3 = vcmp.ge.s32.totalorder %v89_v20, %v737_v5  ;;  %vm126_vm4 = vcmp.lt.s32.totalorder %v89_v20, %v741_v8  ;;  %v219_v53 = vpack.c.b16 %v218_v49, %v217_v48  ;;  %v278_v58 = vpack.c.bf16 %v276_v54, %v276_v54 }
  0x13   :  { %vm147_vm13 = vmand %vm113_vm6, %vm131_vm7  ;;  %vm109_vm6 = vcmp.ge.s32.totalorder %v90_v21, %v737_v5  ;;  %vm127_vm7 = vcmp.lt.s32.totalorder %v90_v21, %v741_v8  ;;  %v279_v59 = vpack.c.bf16 %v277_v55, %v277_v55  ;;  %v321_v60 = vpack.c.bf16 %v319_v56, %v319_v56 }
  0x14   :  { %550 = vmatpush.bf16.msk.msra.mxu0 %vm797_vm8, %v717_v14  ;;  %566 = vmatpush.bf16.msk.msra.mxu1 %vm797_vm8, %v717_v14  ;;  %vm813_vm0 = vmpackc.low %vm147_vm13, %vm146_vm9  ;;  %vm106_vm13 = vcmp.ge.s32.totalorder %v87_v23, %v737_v5  ;;  %v322_v61 = vpack.c.bf16 %v320_v57, %v320_v57  ;;  %v280_v62 = vunpack.c.l.bf16 %v278_v58  ;;  %v301_v4 = vunpack.c.l.b16 %v278_v58 }
  0x15   :  { %582 = vmatpush.bf16.msk.msra.mxu2 %vm797_vm8, %v717_v14  ;;  %598 = vmatpush.bf16.msk.msra.mxu3 %vm797_vm8, %v717_v14  ;;  %vm144_vm2 = vmand %vm110_vm11, %vm128_vm12  ;;  %v281_v63 = vunpack.c.l.bf16 %v279_v59  ;;  %v323_v0 = vunpack.c.l.bf16 %v321_v60  ;;  %v362_v12 = vmul.f32 %v850_v26, %v862_v28  ;;  %v363_v17 = vmul.f32 %v855_v27, %v867_v29 }
  0x16   :  { %vm145_vm5 = vmand %vm111_vm14, %vm129_vm15  ;;  %vm124_vm14 = vcmp.lt.s32.totalorder %v87_v23, %v741_v8  ;;  %vm107_vm15 = vcmp.ge.s32.totalorder %v88_v24, %v737_v5  ;;  %v282_v2 = vsub.f32 %v276_v54, %v280_v62  ;;  %v345_v9 = vunpack.c.l.b16 %v322_v61 }
  0x17   :  { %vm829_vm9 = vmpackc.low %vm145_vm5, %vm144_vm2  ;;  %vm125_vm2 = vcmp.lt.s32.totalorder %v88_v24, %v741_v8  ;;  %v283_v3 = vsub.f32 %v277_v55, %v281_v63  ;;  %v325_v6 = vsub.f32 %v319_v56, %v323_v0  ;;  %v364_v16 = vpack.c.bf16 %v362_v12, %v362_v12 }
  0x18   :  { %552 = vmatpush.bf16.msk.msra.mxu0 %vm813_vm0, %v717_v14  ;;  %568 = vmatpush.bf16.msk.msra.mxu1 %vm813_vm0, %v717_v14  ;;  %vm142_vm11 = vmand %vm108_vm3, %vm126_vm4  ;;  %v365_v18 = vpack.c.bf16 %v363_v17, %v363_v17 }
  0x19   :  { %584 = vmatpush.bf16.msk.msra.mxu2 %vm813_vm0, %v717_v14  ;;  %600 = vmatpush.bf16.msk.msra.mxu3 %vm813_vm0, %v717_v14  ;;  %vm143_vm12 = vmand %vm109_vm6, %vm127_vm7  ;;  %vm104_vm6 = vcmp.ge.s32.totalorder %v733_v1, %v737_v5  ;;  %vm122_vm7 = vcmp.lt.s32.totalorder %v733_v1, %v741_v8  ;;  %v324_v1 = vunpack.c.l.bf16 %v322_v61  ;;  %v284_v10 = vpack.c.bf16 %v283_v3, %v282_v2 }
  0x1a   :  { %vm869_vm3 = vmpackc.low %vm143_vm12, %vm142_vm11  ;;  %vm105_vm11 = vcmp.ge.s32.totalorder %v86_v31, %v737_v5  ;;  %vm123_vm12 = vcmp.lt.s32.totalorder %v86_v31, %v741_v8  ;;  %v302_v5 = vunpack.c.l.b16 %v279_v59  ;;  %v344_v8 = vunpack.c.l.b16 %v321_v60 }
  0x1b   :  { %vm140_vm4 = vmand %vm106_vm13, %vm124_vm14  ;;  %v326_v7 = vsub.f32 %v320_v57, %v324_v1  ;;  %v366_v19 = vunpack.c.l.bf16 %v364_v16  ;;  %v367_v20 = vunpack.c.l.bf16 %v365_v18  ;;  %v387_v23 = vunpack.c.l.b16 %v364_v16 }
  0x1c   :  { %554 = vmatpush.bf16.msk.msra.mxu0 %vm829_vm9, %v717_v14  ;;  %570 = vmatpush.bf16.msk.msra.mxu1 %vm829_vm9, %v717_v14  ;;  %vm141_vm5 = vmand %vm107_vm15, %vm125_vm2  ;;  %v303_v11 = vpack.c.b16 %v302_v5, %v301_v4  ;;  %v346_v15 = vpack.c.b16 %v345_v9, %v344_v8  ;;  %v388_v24 = vunpack.c.l.b16 %v365_v18 }
  0x1d   :  { %586 = vmatpush.bf16.msk.msra.mxu2 %vm829_vm9, %v717_v14  ;;  %602 = vmatpush.bf16.msk.msra.mxu3 %vm829_vm9, %v717_v14  ;;  %vm906_vm13 = vmpackc.low %vm141_vm5, %vm140_vm4  ;;  %v327_v13 = vpack.c.bf16 %v326_v7, %v325_v6  ;;  %v368_v21 = vsub.f32 %v362_v12, %v366_v19  ;;  %v369_v22 = vsub.f32 %v363_v17, %v367_v20 }
  0x1e   :  { %vm138_vm14 = vmand %vm104_vm6, %vm122_vm7  ;;  %v389_v26 = vpack.c.b16 %v388_v24, %v387_v23 }
  0x1f   :  { %vm139_vm15 = vmand %vm105_vm11, %vm123_vm12  ;;  %v370_v25 = vpack.c.bf16 %v369_v22, %v368_v21 }
  0x20   :  { %556 = vmatpush.bf16.msk.msra.mxu0 %vm869_vm3, %v717_v14  ;;  %572 = vmatpush.bf16.msk.msra.mxu1 %vm869_vm3, %v717_v14  ;;  %vm930_vm2 = vmpackc.low %vm139_vm15, %vm138_vm14 }
  0x21   :  { %588 = vmatpush.bf16.msk.msra.mxu2 %vm869_vm3, %v717_v14  ;;  %604 = vmatpush.bf16.msk.msra.mxu3 %vm869_vm3, %v717_v14 }
  0x24   :  { %558 = vmatpush.bf16.msk.msra.mxu0 %vm906_vm13, %v717_v14  ;;  %574 = vmatpush.bf16.msk.msra.mxu1 %vm906_vm13, %v717_v14 }
  0x25   :  { %590 = vmatpush.bf16.msk.msra.mxu2 %vm906_vm13, %v717_v14  ;;  %606 = vmatpush.bf16.msk.msra.mxu3 %vm906_vm13, %v717_v14 }
  0x28   :  { %560 = vmatpush.bf16.msk.msra.mxu0 %vm930_vm2, %v717_v14  ;;  %576 = vmatpush.bf16.msk.msra.mxu1 %vm930_vm2, %v717_v14 }
  0x29   :  { %592 = vmatpush.bf16.msk.msra.mxu2 %vm930_vm2, %v717_v14  ;;  %608 = vmatpush.bf16.msk.msra.mxu3 %vm930_vm2, %v717_v14 }
  0x2b   :  { %209 = vmatmul.bf16.vlgmr.msra.gmra.mxu0 %v200_v52  ;;  %229 = vmatmul.bf16.vlgmr.msra.gmra.mxu1 %v219_v53 }
  0x2c   :  { %610 = vmatpush.bf16.msk.msrb.mxu0 %vm753_vm10, %v717_v14  ;;  %626 = vmatpush.bf16.msk.msrb.mxu1 %vm753_vm10, %v717_v14 }
  0x2d   :  { %642 = vmatpush.bf16.msk.msrb.mxu2 %vm753_vm10, %v717_v14  ;;  %658 = vmatpush.bf16.msk.msrb.mxu3 %vm753_vm10, %v717_v14 }
  0x2e   :  { %250 = vmatmul.bf16.vlgmr.msra.gmra.mxu2 %v241_v50  ;;  %270 = vmatmul.bf16.vlgmr.msra.gmra.mxu3 %v260_v51 }
  0x30   :  { %612 = vmatpush.bf16.msk.msrb.mxu0 %vm775_vm1, %v717_v14  ;;  %628 = vmatpush.bf16.msk.msrb.mxu1 %vm775_vm1, %v717_v14 }
  0x31   :  { %644 = vmatpush.bf16.msk.msrb.mxu2 %vm775_vm1, %v717_v14  ;;  %660 = vmatpush.bf16.msk.msrb.mxu3 %vm775_vm1, %v717_v14 }
  0x34   :  { %614 = vmatpush.bf16.msk.msrb.mxu0 %vm797_vm8, %v717_v14  ;;  %630 = vmatpush.bf16.msk.msrb.mxu1 %vm797_vm8, %v717_v14 }
  0x35   :  { %646 = vmatpush.bf16.msk.msrb.mxu2 %vm797_vm8, %v717_v14  ;;  %662 = vmatpush.bf16.msk.msrb.mxu3 %vm797_vm8, %v717_v14 }
  0x38   :  { %616 = vmatpush.bf16.msk.msrb.mxu0 %vm813_vm0, %v717_v14  ;;  %632 = vmatpush.bf16.msk.msrb.mxu1 %vm813_vm0, %v717_v14 }
  0x39   :  { %648 = vmatpush.bf16.msk.msrb.mxu2 %vm813_vm0, %v717_v14  ;;  %664 = vmatpush.bf16.msk.msrb.mxu3 %vm813_vm0, %v717_v14 }
  0x3c   :  { %618 = vmatpush.bf16.msk.msrb.mxu0 %vm829_vm9, %v717_v14  ;;  %634 = vmatpush.bf16.msk.msrb.mxu1 %vm829_vm9, %v717_v14 }
  0x3d   :  { %650 = vmatpush.bf16.msk.msrb.mxu2 %vm829_vm9, %v717_v14  ;;  %666 = vmatpush.bf16.msk.msrb.mxu3 %vm829_vm9, %v717_v14 }
  0x40   :  { %620 = vmatpush.bf16.msk.msrb.mxu0 %vm869_vm3, %v717_v14  ;;  %636 = vmatpush.bf16.msk.msrb.mxu1 %vm869_vm3, %v717_v14 }
  0x41   :  { %652 = vmatpush.bf16.msk.msrb.mxu2 %vm869_vm3, %v717_v14  ;;  %668 = vmatpush.bf16.msk.msrb.mxu3 %vm869_vm3, %v717_v14 }
  0x44   :  { %622 = vmatpush.bf16.msk.msrb.mxu0 %vm906_vm13, %v717_v14  ;;  %638 = vmatpush.bf16.msk.msrb.mxu1 %vm906_vm13, %v717_v14 }
  0x45   :  { %654 = vmatpush.bf16.msk.msrb.mxu2 %vm906_vm13, %v717_v14  ;;  %670 = vmatpush.bf16.msk.msrb.mxu3 %vm906_vm13, %v717_v14 }
  0x48   :  { %624 = vmatpush.bf16.msk.msrb.mxu0 %vm930_vm2, %v717_v14  ;;  %640 = vmatpush.bf16.msk.msrb.mxu1 %vm930_vm2, %v717_v14 }
  0x49   :  { %656 = vmatpush.bf16.msk.msrb.mxu2 %vm930_vm2, %v717_v14  ;;  %672 = vmatpush.bf16.msk.msrb.mxu3 %vm930_vm2, %v717_v14 }
  0x4b   :  { %293 = vmatmul.bf16.vlgmr.msrb.gmra.mxu0 %v284_v10  ;;  %313 = vmatmul.bf16.vlgmr.msrb.gmra.mxu1 %v303_v11 }
  0x4c   :  { %674 = vmatpush.bf16.msk.msra.mxu0 %vm753_vm10, %v717_v14  ;;  %690 = vmatpush.bf16.msk.msra.mxu1 %vm753_vm10, %v717_v14 }
  0x4d   :  { %336 = vmatmul.bf16.vlgmr.msrb.gmra.mxu2 %v327_v13  ;;  %356 = vmatmul.bf16.vlgmr.msrb.gmra.mxu3 %v346_v15 }
  0x50   :  { %676 = vmatpush.bf16.msk.msra.mxu0 %vm775_vm1, %v717_v14  ;;  %692 = vmatpush.bf16.msk.msra.mxu1 %vm775_vm1, %v717_v14 }
  0x54   :  { %678 = vmatpush.bf16.msk.msra.mxu0 %vm797_vm8, %v717_v14  ;;  %694 = vmatpush.bf16.msk.msra.mxu1 %vm797_vm8, %v717_v14 }
  0x58   :  { %680 = vmatpush.bf16.msk.msra.mxu0 %vm813_vm0, %v717_v14  ;;  %696 = vmatpush.bf16.msk.msra.mxu1 %vm813_vm0, %v717_v14 }
  0x5c   :  { %682 = vmatpush.bf16.msk.msra.mxu0 %vm829_vm9, %v717_v14  ;;  %698 = vmatpush.bf16.msk.msra.mxu1 %vm829_vm9, %v717_v14 }
  0x60   :  { %684 = vmatpush.bf16.msk.msra.mxu0 %vm869_vm3, %v717_v14  ;;  %700 = vmatpush.bf16.msk.msra.mxu1 %vm869_vm3, %v717_v14 }
  0x64   :  { %686 = vmatpush.bf16.msk.msra.mxu0 %vm906_vm13, %v717_v14  ;;  %702 = vmatpush.bf16.msk.msra.mxu1 %vm906_vm13, %v717_v14  ;;  %vm497_vm13 = vcmask 64512  }
  0x68   :  { %688 = vmatpush.bf16.msk.msra.mxu0 %vm930_vm2, %v717_v14  ;;  %704 = vmatpush.bf16.msk.msra.mxu1 %vm930_vm2, %v717_v14 }
  0x6b   :  { %379 = vmatmul.bf16.vlgmr.msra.gmra.mxu0 %v370_v25  ;;  %399 = vmatmul.bf16.vlgmr.msra.gmra.mxu1 %v389_v26 }
  0xa8   :  { %v210_v27 = vpop.f32.mrf.mxu0  ;;  %v230_v28 = vpop.f32.mrf.mxu1 }
  0xa9   :  { %v1104_v33 = vadd.f32 %v230_v28, %v210_v27 }
  0xab   :  { %v405_v39 = vmul.f32 %v1104_v33, %v1104_v33 }
  0xad   :  { %v407_v41 = vmul.f32 0.0625, %v405_v39 }
  0xb0   :  { %v212_v31 = vpop.f32.mrf.mxu0  ;;  %v232_v32 = vpop.f32.mrf.mxu1 }
  0xb1   :  { %v251_v29 = vpop.f32.mrf.mxu2  ;;  %v271_v30 = vpop.f32.mrf.mxu3  ;;  %v1112_v45 = vadd.f32 %v232_v32, %v212_v31 }
  0xb2   :  { %v1106_v36 = vadd.f32 %v271_v30, %v251_v29 }
  0xb3   :  { %v406_v52 = vmul.f32 %v1112_v45, %v1112_v45 }
  0xb4   :  { %v411_v14 = vmul.f32 %v1106_v36, %v1106_v36 }
  0xb5   :  { %v408_v59 = vmul.f32 0.0625, %v406_v52 }
  0xb6   :  { %v413_v44 = vmul.f32 0.0625, %v411_v14 }
  0xb9   :  { %v253_v34 = vpop.f32.mrf.mxu2  ;;  %v273_v35 = vpop.f32.mrf.mxu3 }
  0xba   :  { %v1114_v46 = vadd.f32 %v273_v35, %v253_v34  ;;  %v417_v34 = vmul.f32 %v1106_v36, %v1104_v33 }
  0xbc   :  { %v412_v53 = vmul.f32 %v1114_v46, %v1114_v46 }
  0xbe   :  { %v414_v60 = vmul.f32 0.0625, %v412_v53 }
  0xc8   :  { %v294_v37 = vpop.f32.mrf.mxu0  ;;  %v314_v38 = vpop.f32.mrf.mxu1 }
  0xc9   :  { %v315_v40 = vadd.f32 %v314_v38, %v294_v37 }
  0xcb   :  { %v409_v48 = vsub.f32 %v315_v40, %v407_v41  ;;  %v418_v40 = vmul.f32 %v1114_v46, %v1112_v45 }
  0xd0   :  { %v337_v42 = vpop.f32.mrf.mxu2  ;;  %v357_v43 = vpop.f32.mrf.mxu3 }
  0xd1   :  { %v358_v47 = vadd.f32 %v357_v43, %v337_v42  ;;  %v296_v50 = vpop.f32.mrf.mxu0  ;;  %v316_v51 = vpop.f32.mrf.mxu1 }
  0xd2   :  { %v317_v56 = vadd.f32 %v316_v51, %v296_v50  ;;  %v420_v51 = vmul.f32 0.0625, %v418_v40 }
  0xd3   :  { %v415_v49 = vsub.f32 %v358_v47, %v413_v44  ;;  %v419_v44 = vmul.f32 0.0625, %v417_v34 }
  0xd4   :  { %v410_v62 = vsub.f32 %v317_v56, %v408_v59 }
  0xd5   :  { %v423_v54 = vmul.f32 %v415_v49, %v409_v48 }
  0xd7   :  { %v425_v55 = vmax.f32 %v423_v54, 0.0 }
  0xd8   :  { %v339_v57 = vpop.f32.mrf.mxu2  ;;  %v359_v58 = vpop.f32.mrf.mxu3 }
  0xd9   :  { %709 = vrsqrt.f32 %v425_v55  ;;  %v360_v61 = vadd.f32 %v359_v58, %v339_v57  ;;  %vm434_vm10 = vcmp.eq.f32.partialorder %v425_v55, inf  ;;  %v437_v13 = vand.u32 2147483648, %v425_v55 }
  0xda   :  { %vm436_vm1 = vcmp.eq.f32.partialorder %v425_v55, 0.0 }
  0xdb   :  { %v416_v63 = vsub.f32 %v360_v61, %v414_v60 }
  0xdd   :  { %v424_v0 = vmul.f32 %v416_v63, %v410_v62 }
  0xdf   :  { %v710_v1 = vpop.eup %709  ;;  %v426_v2 = vmax.f32 %v424_v0, 0.0 }
  0xe0   :  { %v428_v3 = vmul.f32 %v710_v1, %v425_v55 }
  0xe1   :  { %711 = vrsqrt.f32 %v426_v2  ;;  %vm446_vm8 = vcmp.eq.f32.partialorder %v426_v2, inf  ;;  %v449_v21 = vand.u32 2147483648, %v426_v2  ;;  %vm448_vm0 = vcmp.eq.f32.partialorder %v426_v2, 0.0 }
  0xe2   :  { %v429_v4 = vmul.f32 %v710_v1, %v428_v3 }
  0xe4   :  { %v430_v5 = vmul.f32 0.5, %v429_v4 }
  0xe6   :  { %v431_v6 = vsub.f32 1.5, %v430_v5 }
  0xe7   :  { %v712_v7 = vpop.eup %711 }
  0xe8   :  { %v440_v8 = vmul.f32 %v712_v7, %v426_v2  ;;  %v432_v9 = vmul.f32 %v710_v1, %v431_v6  ;;  %v380_v23 = vpop.f32.mrf.mxu0  ;;  %v400_v24 = vpop.f32.mrf.mxu1 }
  0xe9   :  { %v401_v41 = vadd.f32 %v400_v24, %v380_v23 }
  0xea   :  { %v433_v10 = vmul.f32 %v432_v9, %v425_v55  ;;  %v441_v11 = vmul.f32 %v712_v7, %v440_v8 }
  0xeb   :  { %v421_v52 = vsub.f32 %v401_v41, %v419_v44 }
  0xec   :  { %v435_v15 = vsel %vm434_vm10, %v425_v55, %v433_v10  ;;  %v442_v12 = vmul.f32 0.5, %v441_v11 }
  0xed   :  { %v438_v17 = vsel %vm436_vm1, %v437_v13, %v435_v15 }
  0xee   :  { %v443_v16 = vsub.f32 1.5, %v442_v12  ;;  %v451_v18 = vadd.f32 0.01, %v438_v17 }
  0xf0   :  { %v444_v19 = vmul.f32 %v712_v7, %v443_v16  ;;  %713 = vrcp.f32 %v451_v18  ;;  %v464_v35 = vand.u32 2147483648, %v451_v18  ;;  %v382_v37 = vpop.f32.mrf.mxu0  ;;  %v402_v38 = vpop.f32.mrf.mxu1  ;;  %vm458_vm3 = vweird.f32 %v451_v18 }
  0xf1   :  { %v462_v39 = vand.u32 2147483647, %v451_v18  ;;  %v403_v47 = vadd.f32 %v402_v38, %v382_v37 }
  0xf2   :  { %v445_v20 = vmul.f32 %v444_v19, %v426_v2  ;;  %v465_v48 = vor.u32 1.1754944e-38, %v464_v35 }
  0xf3   :  { %vm463_vm5 = vcmp.eq.f32.partialorder %v462_v39, 8.507059e+37  ;;  %v422_v55 = vsub.f32 %v403_v47, %v420_v51 }
  0xf4   :  { %v447_v22 = vsel %vm446_vm8, %v426_v2, %v445_v20 }
  0xf5   :  { %v450_v25 = vsel %vm448_vm0, %v449_v21, %v447_v22 }
  0xf6   :  { %v714_v26 = vpop.eup %713  ;;  %v452_v27 = vadd.f32 0.01, %v450_v25 }
  0xf7   :  { %v454_v28 = vmul.f32 %v714_v26, %v451_v18  ;;  %vm459_vm9 = vweird.f32 %v714_v26 }
  0xf8   :  { %715 = vrcp.f32 %v452_v27  ;;  %vm460_vm4 = vmor %vm458_vm3, %vm459_vm9  ;;  %v479_v49 = vand.u32 2147483648, %v452_v27  ;;  %v477_v33 = vand.u32 2147483647, %v452_v27  ;;  %vm473_vm7 = vweird.f32 %v452_v27 }
  0xf9   :  { %v455_v29 = vsub.f32 1.0, %v454_v28 }
  0xfa   :  { %v480_v54 = vor.u32 1.1754944e-38, %v479_v49  ;;  %vm478_vm12 = vcmp.eq.f32.partialorder %v477_v33, 8.507059e+37 }
  0xfb   :  { %v456_v30 = vmul.f32 %v714_v26, %v455_v29 }
  0xfd   :  { %v457_v31 = vadd.f32 %v714_v26, %v456_v30 }
  0xfe   :  { %v716_v32 = vpop.eup %715 }
  0xff   :  { %v469_v14 = vmul.f32 %v716_v32, %v452_v27  ;;  %v461_v42 = vsel %vm460_vm4, %v714_v26, %v457_v31  ;;  %vm474_vm6 = vweird.f32 %v716_v32 }
 0x100   :  { %v466_v36 = vsel %vm463_vm5, %v465_v48, %v461_v42  ;;  %vm475_vm11 = vmor %vm473_vm7, %vm474_vm6 }
 0x101   :  { %v470_v43 = vsub.f32 1.0, %v469_v14  ;;  %v467_v45 = vmul.f32 %v466_v36, %v421_v52 }
 0x103   :  { %v471_v50 = vmul.f32 %v716_v32, %v470_v43  ;;  %v498_v58 = vsel %vm497_vm13, %v467_v45, 0.0 }
 0x105   :  { %v472_v53 = vadd.f32 %v716_v32, %v471_v50 }
 0x107   :  { %v476_v46 = vsel %vm475_vm11, %v716_v32, %v472_v53 }
 0x108   :  { %v481_v56 = vsel %vm478_vm12, %v480_v54, %v476_v46 }
 0x109   :  { %v482_v57 = vmul.f32 %v481_v56, %v422_v55 }
 0x10b   :  { %v499_v59 = vsel %vm497_vm13, %v482_v57, 0.0 }
 0x10c   :  { %v500_v60 = vadd.f32 %v499_v59, %v498_v58 }
 0x10e   :  { %501 = vadd.xlane.f32.xlu0 %v500_v60 }
 0x181   :  { %v502_v61 = vpop.xlane.xlu0 %501 }
 0x182   :  { %v503_v62 = vrot.slane %v502_v61, 4 }
 0x184   :  { %v504_v63 = vadd.f32 %v503_v62, %v502_v61 }
 0x186   :  { %v505_v0 = vrot.slane %v504_v63, 2 }
 0x188   :  { %v506_v1 = vadd.f32 %v505_v0, %v504_v63 }
 0x18a   :  { %v507_v2 = vrot.slane %v506_v1, 1 }
 0x18c   :  { %v508_v3 = vadd.f32 %v507_v2, %v506_v1 }
 0x18e   :  { %705 = vpush %v508_v3 }
 0x1bf   :  { %s706_s0 = spop %705 }
 0x1c0   :  { %v510_v4 = vstv %s706_s0 }
 0x1c1   :  { %512 = vst [vmem:[%s1129_s2] sm:$0xff] %v510_v4 }

</bundles_post_ra>
